<compile_context>
chip_gen: v7x
topology: tpu7x:2x2x1
jax: 0.10.0
libtpu: 0.0.40
codegen_flags: <defaults>
</compile_context>

<pallas_src>
import jax
import jax.numpy as jnp
from jax.experimental import pallas as pl
from jax.experimental.pallas import tpu as pltpu


# ----------------------------------------------------------------------------
# Fused kernel: one grid step per batch sample
# ----------------------------------------------------------------------------
def _fan_attention_kernel(x_ref, w1t_ref, b1_ref, w2_ref, b2_ref, o_ref):
    # x_ref  : (1, C, D)  one sample
    # w1t_ref: (D, H)     Linear1 weight pre-transposed (PyTorch stores it as (H, D))
    # b1_ref : (1, H)
    # w2_ref : (D, H)     Linear2 weight exactly as PyTorch stores it (out=D, in=H)
    # b2_ref : (1, D)
    # o_ref  : (1, C, 1)  sigmoid(sim); squeezed to (B, C) outside the kernel
    xb = x_ref[0]                                                        # (C, D)

    # keys = mean over the channel axis (sublane reduce on the XLU)
    keys = jnp.mean(xb, axis=0, keepdims=True)                           # (1, D)

    # hidden = relu(x @ W1^T + b1)   -- (C, D) x (D, H) on the MXU, f32 accumulation
    h = jnp.dot(xb, w1t_ref[...], preferred_element_type=jnp.float32)    # (C, H)
    h = jnp.maximum(h + b1_ref[...], 0.0)

    # Fused 2nd Linear + dot-with-keys:
    #   kv[h]  = sum_d keys[d] * W2[d, h]                  (matvec, (1,D)x(D,H))
    #   sim[c] = sum_h h[c, h] * kv[h]  +  b2 . keys
    kv = jnp.dot(keys, w2_ref[...], preferred_element_type=jnp.float32)  # (1, H)
    bias = jnp.sum(b2_ref[...] * keys)                                   # scalar: b2 . keys
    sim = jnp.sum(h * kv, axis=1, keepdims=True) + bias                  # (C, 1)

    # sigmoid (explicit exp + reciprocal form; exp runs on the EUP)
    attn = 1.0 / (1.0 + jnp.exp(-sim))
    o_ref[0] = attn.astype(o_ref.dtype)


def fan_attention_v2(x, w1, b1, w2, b2):
    """x: (B, C, D); w1: (H, D); b1: (H,); w2: (D, H); b2: (D,)  ->  attn (B, C)."""
    B, C, D = x.shape
    H = w1.shape[0]
    out = pl.pallas_call(
        _fan_attention_kernel,
        out_shape=jax.ShapeDtypeStruct((B, C, 1), jnp.float32),
        grid=(B,),
        in_specs=[
            pl.BlockSpec((1, C, D), lambda b: (b, 0, 0)),   # per-sample x tile
            pl.BlockSpec((D, H), lambda b: (0, 0)),         # W1^T (shared)
            pl.BlockSpec((1, H), lambda b: (0, 0)),         # b1
            pl.BlockSpec((D, H), lambda b: (0, 0)),         # W2 (shared)
            pl.BlockSpec((1, D), lambda b: (0, 0)),         # b2
        ],
        out_specs=pl.BlockSpec((1, C, 1), lambda b: (b, 0, 0)),
        compiler_params=pltpu.CompilerParams(
            dimension_semantics=("parallel",)),             # v7x: shard batch across 2 TCs
    )(x, w1.T, b1.reshape(1, -1), w2, b2.reshape(1, -1))
    # keep the in-kernel store layout natural (C on sublanes); squeeze is free in XLA
    return out[:, :, 0]


# ----------------------------------------------------------------------------
# Pure-JAX reference (mirrors the PyTorch forward semantics, no fusion)
# ----------------------------------------------------------------------------
def reference_forward(x, w1, b1, w2, b2):
    h = jnp.maximum(jnp.einsum("bcd,hd->bch", x, w1) + b1, 0.0)   # Linear1 + ReLU
    q = jnp.einsum("bch,dh->bcd", h, w2) + b2                     # Linear2
    keys = x.mean(axis=1)                                         # (B, D)
    sim = jnp.einsum("bcd,bd->bc", q, keys)
    return jax.nn.sigmoid(sim)


# ----------------------------------------------------------------------------
if __name__ == "__main__":
    # small shapes consistent with the module: emb_dim=128 -> hidden = emb_dim // 16 = 8
    B, C, D = 2, 8, 128
    H = D // 16

    key = jax.random.PRNGKey(0)
    ks = jax.random.split(key, 5)
    x = jax.random.normal(ks[0], (B, C, D), jnp.float32)
    # Linear(D, H): weight (H, D), bias (H,)
    w1 = jax.random.normal(ks[1], (H, D), jnp.float32) / jnp.sqrt(D)
    b1 = 0.1 * jax.random.normal(ks[2], (H,), jnp.float32)
    # Linear(H, D): weight (D, H), bias (D,)
    w2 = jax.random.normal(ks[3], (D, H), jnp.float32) / jnp.sqrt(H)
    b2 = 0.1 * jax.random.normal(ks[4], (D,), jnp.float32)

    attn = fan_attention_v2(x, w1, b1, w2, b2)
    attn = jax.block_until_ready(attn)

    ref = jax.block_until_ready(reference_forward(x, w1, b1, w2, b2))

    assert attn.shape == (B, C)
    assert jnp.allclose(attn, ref, atol=1e-5, rtol=1e-5), (attn, ref)
    print("KERNEL_OK")
</pallas_src>

<mosaic_0001>
module attributes {stable_mosaic.version = 11 : i64} {
  func.func @_fan_attention_kernel(%arg0: i32, %arg1: memref<1x8x128xf32, #tpu.memory_space<vmem>>, %arg2: memref<128x8xf32, #tpu.memory_space<vmem>>, %arg3: memref<1x8xf32, #tpu.memory_space<vmem>>, %arg4: memref<128x8xf32, #tpu.memory_space<vmem>>, %arg5: memref<1x128xf32, #tpu.memory_space<vmem>>, %arg6: memref<1x8x1xf32, #tpu.memory_space<vmem>>) attributes {dimension_semantics = [#tpu.dimension_semantics<parallel>], iteration_bounds = array<i64: 2>, scalar_prefetch = 0 : i64, scratch_operands = 0 : i64, tpu.core_type = #tpu.core_type<tc>, window_params = [{transform_indices = @transform_0, window_bounds = array<i64: 1, 8, 128>}, {pipeline_mode = #tpu.pipeline_mode<synchronous>, transform_indices = @transform_1, window_bounds = array<i64: 128, 8>}, {pipeline_mode = #tpu.pipeline_mode<synchronous>, transform_indices = @transform_2, window_bounds = array<i64: 1, 8>}, {pipeline_mode = #tpu.pipeline_mode<synchronous>, transform_indices = @transform_3, window_bounds = array<i64: 128, 8>}, {pipeline_mode = #tpu.pipeline_mode<synchronous>, transform_indices = @transform_4, window_bounds = array<i64: 1, 128>}, {transform_indices = @transform_5, window_bounds = array<i64: 1, 8, 1>}]} {
    %c0 = arith.constant 0 : index
    %c0_0 = arith.constant 0 : index
    %c0_1 = arith.constant 0 : index
    %0 = vector.load %arg1[%c0, %c0_0, %c0_1] : memref<1x8x128xf32, #tpu.memory_space<vmem>>, vector<1x8x128xf32>
    %1 = vector.shape_cast %0 : vector<1x8x128xf32> to vector<8x128xf32>
    %cst = arith.constant dense<0.000000e+00> : vector<128xf32>
    %2 = vector.multi_reduction <add>, %1, %cst [0] : vector<8x128xf32> to vector<128xf32>
    %3 = vector.shape_cast %2 : vector<128xf32> to vector<1x128xf32>
    %cst_2 = arith.constant 8.000000e+00 : f32
    %4 = vector.broadcast %cst_2 : f32 to vector<1x128xf32>
    %5 = arith.divf %3, %4 : vector<1x128xf32>
    %c0_3 = arith.constant 0 : index
    %c0_4 = arith.constant 0 : index
    %6 = vector.load %arg2[%c0_3, %c0_4] : memref<128x8xf32, #tpu.memory_space<vmem>>, vector<128x8xf32>
    %cst_5 = arith.constant dense<0.000000e+00> : vector<8x8xf32>
    %7 = tpu.matmul %1, %6, %cst_5 {dimension_numbers = #tpu.dot_dimension_numbers<[1], [0], [0], [1], [0, 0, 1, 1], [], []>} : vector<8x128xf32>, vector<128x8xf32>, vector<8x8xf32> -> vector<8x8xf32>
    %c0_6 = arith.constant 0 : index
    %c0_7 = arith.constant 0 : index
    %8 = vector.load %arg3[%c0_6, %c0_7] : memref<1x8xf32, #tpu.memory_space<vmem>>, vector<1x8xf32>
    %9 = vector.broadcast %8 : vector<1x8xf32> to vector<8x8xf32>
    %10 = arith.addf %7, %9 : vector<8x8xf32>
    %cst_8 = arith.constant 0.000000e+00 : f32
    %11 = vector.broadcast %cst_8 : f32 to vector<8x8xf32>
    %12 = arith.maximumf %10, %11 : vector<8x8xf32>
    %c0_9 = arith.constant 0 : index
    %c0_10 = arith.constant 0 : index
    %13 = vector.load %arg4[%c0_9, %c0_10] : memref<128x8xf32, #tpu.memory_space<vmem>>, vector<128x8xf32>
    %cst_11 = arith.constant dense<0.000000e+00> : vector<1x8xf32>
    %14 = tpu.matmul %5, %13, %cst_11 {dimension_numbers = #tpu.dot_dimension_numbers<[1], [0], [0], [1], [0, 0, 1, 1], [], []>} : vector<1x128xf32>, vector<128x8xf32>, vector<1x8xf32> -> vector<1x8xf32>
    %c0_12 = arith.constant 0 : index
    %c0_13 = arith.constant 0 : index
    %15 = vector.load %arg5[%c0_12, %c0_13] : memref<1x128xf32, #tpu.memory_space<vmem>>, vector<1x128xf32>
    %16 = arith.mulf %15, %5 : vector<1x128xf32>
    %17 = vector.shape_cast %16 : vector<1x128xf32> to vector<1x1x128xf32>
    %cst_14 = arith.constant dense<0.000000e+00> : vector<1xf32>
    %18 = vector.multi_reduction <add>, %17, %cst_14 [1, 2] : vector<1x1x128xf32> to vector<1xf32>
    %19 = vector.shape_cast %18 : vector<1xf32> to vector<1x1x1xf32>
    %20 = vector.extract %19[0, 0, 0] : f32 from vector<1x1x1xf32>
    %21 = vector.broadcast %14 : vector<1x8xf32> to vector<8x8xf32>
    %22 = arith.mulf %12, %21 : vector<8x8xf32>
    %cst_15 = arith.constant dense<0.000000e+00> : vector<8xf32>
    %23 = vector.multi_reduction <add>, %22, %cst_15 [1] : vector<8x8xf32> to vector<8xf32>
    %24 = vector.shape_cast %23 : vector<8xf32> to vector<8x1xf32>
    %25 = vector.broadcast %20 : f32 to vector<8x1xf32>
    %26 = arith.addf %24, %25 : vector<8x1xf32>
    %cst_16 = arith.constant 0.000000e+00 : f32
    %27 = vector.broadcast %cst_16 : f32 to vector<8x1xf32>
    %28 = arith.subf %27, %26 : vector<8x1xf32>
    %29 = math.exp %28 : vector<8x1xf32>
    %cst_17 = arith.constant 1.000000e+00 : f32
    %30 = vector.broadcast %cst_17 : f32 to vector<8x1xf32>
    %31 = arith.addf %30, %29 : vector<8x1xf32>
    %cst_18 = arith.constant 1.000000e+00 : f32
    %32 = vector.broadcast %cst_18 : f32 to vector<8x1xf32>
    %33 = arith.divf %32, %31 : vector<8x1xf32>
    %c0_19 = arith.constant 0 : index
    %c0_20 = arith.constant 0 : index
    %c0_21 = arith.constant 0 : index
    %34 = vector.load %arg6[%c0_19, %c0_20, %c0_21] : memref<1x8x1xf32, #tpu.memory_space<vmem>>, vector<1x8x1xf32>
    %35 = vector.shape_cast %34 : vector<1x8x1xf32> to vector<8x1xf32>
    %36 = vector.shape_cast %33 : vector<8x1xf32> to vector<1x8x1xf32>
    tpu.vector_store %arg6[%c0_19, %c0_20, %c0_21], %36 {strides = array<i32>} : memref<1x8x1xf32, #tpu.memory_space<vmem>>, vector<1x8x1xf32>,
    return
  }
  func.func @transform_0(%arg0: i32) -> (i32, i32, i32) {
    %c0_i32 = arith.constant 0 : i32
    %c0_i32_0 = arith.constant 0 : i32
    %c0_i32_1 = arith.constant 0 : i32
    return %arg0, %c0_i32, %c0_i32_0 : i32, i32, i32
  }
  func.func @transform_1(%arg0: i32) -> (i32, i32) {
    %c0_i32 = arith.constant 0 : i32
    %c0_i32_0 = arith.constant 0 : i32
    %c0_i32_1 = arith.constant 0 : i32
    return %c0_i32, %c0_i32_0 : i32, i32
  }
  func.func @transform_2(%arg0: i32) -> (i32, i32) {
    %c0_i32 = arith.constant 0 : i32
    %c0_i32_0 = arith.constant 0 : i32
    %c0_i32_1 = arith.constant 0 : i32
    return %c0_i32, %c0_i32_0 : i32, i32
  }
  func.func @transform_3(%arg0: i32) -> (i32, i32) {
    %c0_i32 = arith.constant 0 : i32
    %c0_i32_0 = arith.constant 0 : i32
    %c0_i32_1 = arith.constant 0 : i32
    return %c0_i32, %c0_i32_0 : i32, i32
  }
  func.func @transform_4(%arg0: i32) -> (i32, i32) {
    %c0_i32 = arith.constant 0 : i32
    %c0_i32_0 = arith.constant 0 : i32
    %c0_i32_1 = arith.constant 0 : i32
    return %c0_i32, %c0_i32_0 : i32, i32
  }
  func.func @transform_5(%arg0: i32) -> (i32, i32, i32) {
    %c0_i32 = arith.constant 0 : i32
    %c0_i32_0 = arith.constant 0 : i32
    %c0_i32_1 = arith.constant 0 : i32
    return %arg0, %c0_i32, %c0_i32_0 : i32, i32, i32
  }
}

</mosaic_0001>

<bundles_post_ra>
// kernel: tpu_custom_call.1
= control target key start
LH: loop header
LB: loop body
LE: loop exit
PB: predicated region body
PF: predicated region fallthrough
CT: control target
= control target key end

     0   :  { %s714_s18 = smov 0   ;;  %s856_s0 = inlined_call_operand.vmem [shape: f32[2,8,128], index: 0, kind: input, shape index: {}]   ;;  %s857_s1 = inlined_call_operand.vmem [shape: f32[128,8], index: 1, kind: input, shape index: {}]   ;;  %s858_s2 = inlined_call_operand.vmem [shape: f32[1,8], index: 2, kind: input, shape index: {}]   ;;  %s859_s3 = inlined_call_operand.vmem [shape: f32[128,8], index: 3, kind: input, shape index: {}]   ;;  %s860_s4 = inlined_call_operand.vmem [shape: f32[1,128], index: 4, kind: input, shape index: {}]   ;;  %s861_s5 = inlined_call_operand.vmem [shape: f32[2,8,1], index: 5, kind: output, shape index: {}]  }
   0x1 LB: > { %s494_s19 = sadd.s32 4294967295, %s679_s18   ;;  %p498_p0 = scmp.ge.s32.totalorder %s679_s18, 1  ;;  %s679_s18 = sphi %s714_s18, %s15_s18  }
   0x2   : > { %p186_p1 = scmp.lt.s32.totalorder %s679_s18, 3 }
   0x4   : > { %p187_p2 = pnand %p498_p0, %p186_p1 }
   0x5   : > { %v229_v0 = vld [vmem:[%s857_s1] sm:$0xff] (!%p187_p2)  ;;  %v230_v1 = vld [vmem:[%s857_s1 + $0x8] sm:$0xff] (!%p187_p2)  ;;  %v681_v3 = vmov (!%p187_p2), 0.0|0.0   ;;  %v231_v6 = vld [vmem:[%s857_s1 + $0x10] sm:$0xff] (!%p187_p2)  ;;  %p212_p3 = scmp.lt.s32.totalorder (!%p187_p2), %s494_s19, 1  ;;  %vm682_vm0 = vmmov (!%p187_p2), 0  }
   0x6   : > { %190 = sbr.rel (%p187_p2) target bundleno = 431 (0x1af), region = 40  ;;  %v323_v2 = vld [vmem:[%s859_s3] sm:$0xff] (!%p187_p2)  ;;  %608 = vmatprep.subr.bf16.mxu0 (!%p187_p2), %v681_v3  ;;  %v609_v4 = vpack.c.bf16 (!%p187_p2), %v230_v1, %v229_v0  ;;  %632 = vmatprep.subr.bf16.mxu1 (!%p187_p2), %v681_v3  ;;  %v324_v5 = vld [vmem:[%s859_s3 + $0x8] sm:$0xff] (!%p187_p2)  ;;  %v232_v7 = vld [vmem:[%s857_s1 + $0x18] sm:$0xff] (!%p187_p2)  ;;  %v683_v11 = vmov (!%p187_p2), 0.0   ;;  %vm411_vm1 = vcmask (!%p187_p2), 1040384  }
   0x7   : > { %v633_v8 = vpack.c.bf16 (!%p187_p2), %v324_v5, %v323_v2  ;;  %v325_v9 = vld [vmem:[%s859_s3 + $0x10] sm:$0xff] (!%p187_p2)  ;;  %v326_v10 = vld [vmem:[%s859_s3 + $0x18] sm:$0xff] (!%p187_p2)  ;;  %570 = vmatprep.mubr.msk.f32.mxu0 (!%p187_p2), %vm682_vm0, %v683_v11  ;;  %605 = vmatprep.mubr.msk.f32.mxu1 (!%p187_p2), %vm682_vm0, %v683_v11  ;;  %v612_v12 = vpack.c.bf16 (!%p187_p2), %v232_v7, %v231_v6  ;;  %v233_v14 = vld [vmem:[%s857_s1 + $0x20] sm:$0xff] (!%p187_p2)  ;;  %v422_v5 = vlaneseq (!%p187_p2)  ;;  %vm427_vm2 = vcmask (!%p187_p2), 64512  }
   0x8   : > { %610 = vmatpush3.bf16.msra.mxu0 (!%p187_p2), %v609_v4  ;;  %v636_v13 = vpack.c.bf16 (!%p187_p2), %v326_v10, %v325_v9  ;;  %v234_v15 = vld [vmem:[%s857_s1 + $0x28] sm:$0xff] (!%p187_p2)  ;;  %v327_v16 = vld [vmem:[%s859_s3 + $0x20] sm:$0xff] (!%p187_p2)  ;;  %v235_v20 = vld [vmem:[%s857_s1 + $0x30] sm:$0xff] (!%p187_p2)  ;;  %vm439_vm3 = vcmask (!%p187_p2), 7168  }
   0x9   : > { %634 = vmatpush3.bf16.msra.mxu1 (!%p187_p2), %v633_v8  ;;  %611 = vmatprep.subr.bf16.mxu0 (!%p187_p2), %v681_v3  ;;  %v328_v17 = vld [vmem:[%s859_s3 + $0x28] sm:$0xff] (!%p187_p2)  ;;  %v615_v18 = vpack.c.bf16 (!%p187_p2), %v234_v15, %v233_v14  ;;  %v236_v21 = vld [vmem:[%s857_s1 + $0x38] sm:$0xff] (!%p187_p2)  ;;  %v329_v22 = vld [vmem:[%s859_s3 + $0x30] sm:$0xff] (!%p187_p2)  ;;  %v423_v6 = vshrl.u32 (!%p187_p2), %v422_v5, 7 }
   0xa   : > { %635 = vmatprep.subr.bf16.mxu1 (!%p187_p2), %v681_v3  ;;  %v639_v19 = vpack.c.bf16 (!%p187_p2), %v328_v17, %v327_v16  ;;  %v330_v23 = vld [vmem:[%s859_s3 + $0x38] sm:$0xff] (!%p187_p2)  ;;  %v618_v25 = vpack.c.bf16 (!%p187_p2), %v236_v21, %v235_v20  ;;  %v237_v28 = vld [vmem:[%s857_s1 + $0x40] sm:$0xff] (!%p187_p2)  ;;  %v238_v29 = vld [vmem:[%s857_s1 + $0x48] sm:$0xff] (!%p187_p2) }
   0xb   : > { %v642_v27 = vpack.c.bf16 (!%p187_p2), %v330_v23, %v329_v22  ;;  %v331_v30 = vld [vmem:[%s859_s3 + $0x40] sm:$0xff] (!%p187_p2)  ;;  %v332_v31 = vld [vmem:[%s859_s3 + $0x48] sm:$0xff] (!%p187_p2)  ;;  %v621_v33 = vpack.c.bf16 (!%p187_p2), %v238_v29, %v237_v28  ;;  %v239_v36 = vld [vmem:[%s857_s1 + $0x50] sm:$0xff] (!%p187_p2) }
   0xc   : > { %613 = vmatpush3.bf16.msra.mxu0 (!%p187_p2), %v612_v12  ;;  %v645_v35 = vpack.c.bf16 (!%p187_p2), %v332_v31, %v331_v30  ;;  %v240_v37 = vld [vmem:[%s857_s1 + $0x58] sm:$0xff] (!%p187_p2)  ;;  %v333_v38 = vld [vmem:[%s859_s3 + $0x50] sm:$0xff] (!%p187_p2)  ;;  %v241_v44 = vld [vmem:[%s857_s1 + $0x60] sm:$0xff] (!%p187_p2) }
   0xd   : > { %s863_s19 = smov (!%p212_p3, %s494_s19), 1  ;;  %637 = vmatpush3.bf16.msra.mxu1 %v636_v13  ;;  %614 = vmatprep.subr.bf16.mxu0 %v681_v3  ;;  %v334_v39 = vld [vmem:[%s859_s3 + $0x58] sm:$0xff]  ;;  %v624_v41 = vpack.c.bf16 %v240_v37, %v239_v36  ;;  %v242_v45 = vld [vmem:[%s857_s1 + $0x68] sm:$0xff]  ;;  %v335_v46 = vld [vmem:[%s859_s3 + $0x60] sm:$0xff] }
   0xe   : > { %s499_s21 = sshll.u32 %s863_s19, 3  ;;  %638 = vmatprep.subr.bf16.mxu1 %v681_v3  ;;  %v648_v43 = vpack.c.bf16 %v334_v39, %v333_v38  ;;  %v336_v47 = vld [vmem:[%s859_s3 + $0x68] sm:$0xff]  ;;  %v409_v49 = vld [vmem:[%s860_s4] sm:$0x1]  ;;  %v627_v50 = vpack.c.bf16 %v242_v45, %v241_v44  ;;  %v243_v53 = vld [vmem:[%s857_s1 + $0x70] sm:$0xff] }
   0xf   : > { %s215_s24 = scalar_lea.vmem %s856_s0, %s499_s21  ;;  %v651_v52 = vpack.c.bf16 %v336_v47, %v335_v46  ;;  %v244_v54 = vld [vmem:[%s857_s1 + $0x78] sm:$0xff]  ;;  %v337_v55 = vld [vmem:[%s859_s3 + $0x70] sm:$0xff]  ;;  %v501_v7 = vld [vmem:[%s858_s2] ss:$0 sm:$0xff]  ;;  %s219_s28 = scalar_lea.vmem %s861_s5, %s499_s21 }
  0x10   : > { %v220_v24 = vld [vmem:[%s215_s24] sm:$0xff]  ;;  %616 = vmatpush3.bf16.msra.mxu0 %v615_v18  ;;  %v338_v56 = vld [vmem:[%s859_s3 + $0x78] sm:$0xff]  ;;  %v630_v58 = vpack.c.bf16 %v244_v54, %v243_v53 }
  0x11   : > { %v221_v26 = vrot.slane %v220_v24, 4  ;;  %640 = vmatpush3.bf16.msra.mxu1 %v639_v19  ;;  %617 = vmatprep.subr.bf16.mxu0 %v681_v3  ;;  %v654_v60 = vpack.c.bf16 %v338_v56, %v337_v55 }
  0x12   : > { %641 = vmatprep.subr.bf16.mxu1 %v681_v3 }
  0x13   : > { %v222_v32 = vadd.f32 %v221_v26, %v220_v24 }
  0x14   : > { %619 = vmatpush3.bf16.msra.mxu0 %v618_v25 }
  0x15   : > { %v223_v34 = vrot.slane %v222_v32, 2  ;;  %643 = vmatpush3.bf16.msra.mxu1 %v642_v27  ;;  %620 = vmatprep.subr.bf16.mxu0 %v681_v3 }
  0x16   : > { %644 = vmatprep.subr.bf16.mxu1 %v681_v3 }
  0x17   : > { %v224_v40 = vadd.f32 %v223_v34, %v222_v32 }
  0x18   : > { %622 = vmatpush3.bf16.msra.mxu0 %v621_v33 }
  0x19   : > { %v225_v42 = vrot.slane %v224_v40, 1  ;;  %646 = vmatpush3.bf16.msra.mxu1 %v645_v35  ;;  %623 = vmatprep.subr.bf16.mxu0 %v681_v3 }
  0x1a   : > { %647 = vmatprep.subr.bf16.mxu1 %v681_v3 }
  0x1b   : > { %v226_v48 = vadd.f32 %v225_v42, %v224_v40 }
  0x1c   : > { %625 = vmatpush3.bf16.msra.mxu0 %v624_v41 }
  0x1d   : > { %v228_v51 = vmul.f32 0.125, %v226_v48  ;;  %649 = vmatpush3.bf16.msra.mxu1 %v648_v43  ;;  %626 = vmatprep.subr.bf16.mxu0 %v681_v3 }
  0x1e   : > { %650 = vmatprep.subr.bf16.mxu1 %v681_v3 }
  0x1f   : > { %v410_v57 = vmul.f32 %v409_v49, %v228_v51 }
  0x20   : > { %628 = vmatpush3.bf16.msra.mxu0 %v627_v50 }
  0x21   : > { %v412_v59 = vsel %vm411_vm1, %v410_v57, 0.0  ;;  %652 = vmatpush3.bf16.msra.mxu1 %v651_v52  ;;  %629 = vmatprep.subr.bf16.mxu0 %v681_v3 }
  0x22   : > { %653 = vmatprep.subr.bf16.mxu1 %v681_v3  ;;  %413 = vadd.xlane.f32.xlu0 %v412_v59  ;;  %v424_v3 = vsub.s32 0, %v423_v6 }
  0x24   : > { %631 = vmatpush3.bf16.msra.mxu0 %v630_v58 }
  0x25   : > { %655 = vmatpush3.bf16.msra.mxu1 %v654_v60 }
  0x27   : > { %571 = vmatmul.mubr.f32.vlgmr.msra.gmra.mrb[0].mxu0 %v220_v24 }
  0x28   : > { %606 = vmatmul.mubr.f32.vlgmr.msra.gmra.mrb[0].mxu1 %v228_v51 }
  0xaf   : > { %v414_v61 = vpop.xlane.xlu0 %413 }
  0xb0   : > { %v415_v62 = vrot.slane %v414_v61, 4 }
  0xb2   : > { %v416_v63 = vadd.f32 %v415_v62, %v414_v61 }
  0xb4   : > { %v417_v0 = vrot.slane %v416_v63, 2 }
  0xb6   : > { %v418_v1 = vadd.f32 %v417_v0, %v416_v63 }
  0xb8   : > { %v419_v2 = vrot.slane %v418_v1, 1 }
  0xba   : > { %v420_v4 = vadd.f32 %v419_v2, %v418_v1 }
  0xbc   : > { %656 = vpush %v420_v4 }
  0xed   : > { %s657_s25 = spop %656 }
  0xee   : > { %v431_v17 = vstv %s657_s25 }
  0xfa   : > { %v318_v8 = vpop.f32.mrb[0].mxu0 }
  0xfb   : > { %v319_v9 = vadd.f32 %v501_v7, %v318_v8  ;;  %v572_v10 = vpop.f32.mrb[1].mxu0  ;;  %v405_v11 = vpop.f32.mrb[0].mxu1 }
  0xfc   : > { %v425_v12 = vrot.slane %v405_v11, %v424_v3  ;;  %v607_v13 = vpop.f32.mrb[1].mxu1 }
  0xfd   : > { %v322_v14 = vmax.f32 %v319_v9, 0.0 }
  0xff   : > { %v426_v15 = vmul.f32 %v425_v12, %v322_v14 }
 0x101   : > { %v428_v16 = vsel %vm427_vm2, %v426_v15, 0.0 }
 0x102   : > { %429 = vadd.xlane.f32.xlu0 %v428_v16 }
 0x18f   : > { %v430_v18 = vpop.xlane.xlu0 %429 }
 0x190   : > { %v432_v19 = vadd.f32 %v431_v17, %v430_v18 }
 0x192   : > { %v433_v20 = vsub.f32 0.0, %v432_v19 }
 0x194   : > { %v434_v21 = vmul.f32 1.442695, %v433_v20 }
 0x196   : > { %669 = vpow2.f32 %v434_v21 }
 0x1a0   : > { %v670_v22 = vpop.eup %669 }
 0x1a1   : > { %v436_v23 = vadd.f32 1.0, %v670_v22 }
 0x1a3   : > { %671 = vrcp.f32 %v436_v23 }
 0x1ad   : > { %v672_v24 = vpop.eup %671 }
 0x1ae   : > { %440 = vst.msk [vmem:[%s219_s28] sm:$0xff] %vm439_vm3, %v672_v24 }
 0x1af PF: > { %s15_s18 = sadd.s32 1, %s679_s18  }
 0x1b0   : > { %p12_p4 = scmp.ge.s32.totalorder %s15_s18, 4  }
 0x1b2   :  { %14 = sbr.rel (!%p12_p4) target bundleno = 1 (0x1), region = 70 }

</bundles_post_ra>
